<compile_context>
chip_gen: v7x
topology: tpu7x:2x2x1
jax: 0.10.0
libtpu: 0.0.40
codegen_flags: <defaults>
</compile_context>

<pallas_src>
import jax
import jax.numpy as jnp
from jax.experimental import pallas as pl
from jax.experimental.pallas import tpu as pltpu


def _attn_pool_fc_kernel(x_ref, w_ref, u_ref, fcw_ref, fcb_ref, out_ref):
    TB, S, H = x_ref.shape

    # One big MXU matmul over all TB*S rows of the block (f32 accumulation).
    x2d = x_ref[...].reshape(TB * S, H)                              # minor dim unchanged
    scores2d = jnp.tanh(
        jnp.dot(x2d, w_ref[...], preferred_element_type=jnp.float32)
    )
    # Keep scores in the input dtype (bf16 when mxu_dtype=bf16): it is the largest live
    # intermediate and tanh output in [-1, 1] is well-conditioned for bf16.
    scores2d = scores2d.astype(x_ref.dtype)                          # (TB*S, H)

    # Attention logits on the VPU (broadcast-multiply) + lane reduce (XLU), keeping the
    # MXU free: an N=1 matmul would still cost ~1/3 of the main matmul's MXU pushes.
    u_row = u_ref[...].astype(jnp.float32)                           # (1, H)
    logits = jnp.sum(scores2d * u_row, axis=-1, keepdims=True)       # (TB*S, 1) f32
    logits = logits.reshape(TB, S, 1)

    # Numerically stable softmax over the sequence axis (PyTorch dim=1), per batch row.
    m = jnp.max(logits, axis=1, keepdims=True)                       # (TB, 1, 1)
    e = jnp.exp(logits - m)                                          # (TB, S, 1)
    denom = jnp.sum(e, axis=1, keepdims=True)                        # (TB, 1, 1)
    attn = e / denom                    # exact divide (denom is tiny; approx vrcp failed 1e-5)

    # Weighted sum over the sequence: VPU broadcast-multiply + sublane reduce (XLU),
    # instead of per-batch-row (1,S)@(S,H) MXU contractions that re-stream the RHS.
    scores = scores2d.reshape(TB, S, H)
    pooled = jnp.sum(scores * attn, axis=1)                          # (TB, H) f32

    # Final linear layer for the whole block; one small MXU op, dense (TB, C) store.
    out = jnp.dot(pooled, fcw_ref[...],
                  preferred_element_type=jnp.float32) + fcb_ref[...]
    out_ref[...] = out.astype(out_ref.dtype)


def _vmem_capacity_bytes():
    try:
        return int(pltpu.get_tpu_info().vmem_capacity_bytes)
    except Exception:
        return 64 * 1024 * 1024        # conservative (v7x per-TC VMEM)


def attention_net_fc(x_enc, w_omega, u_omega, fc_w, fc_b, *,
                     batch_block=None, mxu_dtype=None):
    """x_enc: (B, S, H); fc_w: (C, H) torch-style Linear weight; fc_b: (C,).

    mxu_dtype: optional dtype (e.g. jnp.bfloat16) for the heavy scores-matmul operands.
    Recommended on all TPU generations (v5e/v6e/v7x MXUs are native bf16); accumulation,
    softmax and tanh stay in float32.
    """
    B, S, H = x_enc.shape
    C = fc_w.shape[0]

    if mxu_dtype is not None:
        x_enc = x_enc.astype(mxu_dtype)
        w_omega = w_omega.astype(mxu_dtype)

    itemsize = jnp.dtype(x_enc.dtype).itemsize

    # VMEM budget: <= 48 MiB and <= 3/4 of the per-core capacity (v7x has only 64 MiB).
    vmem_budget = min(48 * 1024 * 1024, (3 * _vmem_capacity_bytes()) // 4)

    def block_bytes(tb):
        x_block = tb * S * H * itemsize            # double-buffered input block
        scores = tb * S * H * 4                    # f32 upper bound for the scores intermediate
        weights = H * H * itemsize + H * 4 + H * C * 4 + C * 4
        out_blk = tb * C * 4
        return 2 * x_block + scores + 2 * weights + 2 * out_blk

    if batch_block is None:
        # Target ~2048 MXU rows per grid step, shrunk until the working set fits VMEM.
        TB = max(1, min(B, max(1, 2048 // max(S, 1))))
        while TB > 1 and block_bytes(TB) > vmem_budget:
            TB //= 2
        # v7x has 2 TensorCores: prefer >= 2 grid steps when the batch allows it so the
        # "parallel" batch axis can feed both cores.
        if TB >= B and B >= 16:
            TB = (B + 1) // 2
    else:
        TB = batch_block

    if TB < B:
        # Output is tiled along the batch dim: keep the block a multiple of 8 (sublane
        # tiling legality); otherwise fall back to a single block covering the batch.
        TB = max(8, (TB // 8) * 8) if TB >= 8 else min(B, 8)
    if TB >= B:
        TB = B

    Bp = pl.cdiv(B, TB) * TB
    if Bp != B:
        # Zero-padded batch rows produce bias-only outputs; sliced off below.
        x_enc = jnp.pad(x_enc, ((0, Bp - B), (0, 0), (0, 0)))

    fc_w_t = jnp.transpose(fc_w).astype(jnp.float32)   # (H, C): kernel computes pooled @ W^T
    fc_b_2d = fc_b.reshape(1, C).astype(jnp.float32)
    u_row = u_omega.reshape(1, H).astype(jnp.float32)  # (1, H) for VPU broadcast-multiply

    vmem_limit = int(max(32 * 1024 * 1024, vmem_budget))

    out = pl.pallas_call(
        _attn_pool_fc_kernel,
        out_shape=jax.ShapeDtypeStruct((Bp, C), jnp.float32),
        grid_spec=pltpu.PrefetchScalarGridSpec(
            num_scalar_prefetch=0,
            grid=(Bp // TB,),
            in_specs=[
                pl.BlockSpec((TB, S, H), lambda b: (b, 0, 0)),   # batch-blocked encoder slab
                pl.BlockSpec((H, H), lambda b: (0, 0)),          # w_omega (resident)
                pl.BlockSpec((1, H), lambda b: (0, 0)),          # u_omega row (resident)
                pl.BlockSpec((H, C), lambda b: (0, 0)),          # fc weight^T (resident)
                pl.BlockSpec((1, C), lambda b: (0, 0)),          # fc bias (resident)
            ],
            out_specs=pl.BlockSpec((TB, C), lambda b: (b, 0)),   # dense (TB, C) store
        ),
        compiler_params=pltpu.CompilerParams(
            dimension_semantics=("parallel",),   # v7x: 2 TCs split the batch blocks
            vmem_limit_bytes=vmem_limit,
        ),
    )(x_enc, w_omega, u_row, fc_w_t, fc_b_2d)

    return out[:B] if Bp != B else out


def reference(x_enc, w_omega, u_omega, fc_w, fc_b):
    scores = jnp.tanh(jnp.einsum("bsh,hk->bsk", x_enc, w_omega))
    logits = jnp.einsum("bsh,ho->bso", scores, u_omega)              # (B, S, 1)
    attn = jax.nn.softmax(logits, axis=1)
    pooled = jnp.sum(scores * attn, axis=1)                          # (B, H)
    return pooled @ fc_w.T + fc_b


if __name__ == "__main__":
    # Small shapes consistent with the module's forward.
    B, S, H, C = 2, 8, 32, 4

    key = jax.random.PRNGKey(0)
    k_x, k_w, k_u, k_fw, k_fb = jax.random.split(key, 5)

    # Synthetic "encoder_out" (stands in for BertModel(...)[0]).
    x_enc = jax.random.normal(k_x, (B, S, H), dtype=jnp.float32)

    # Parameters matching the module's init ranges.
    w_omega = jax.random.uniform(k_w, (H, H), minval=-0.1, maxval=0.1, dtype=jnp.float32)
    u_omega = jax.random.uniform(k_u, (H, 1), minval=-0.1, maxval=0.1, dtype=jnp.float32)
    bound = 1.0 / (H ** 0.5)
    fc_w = jax.random.uniform(k_fw, (C, H), minval=-bound, maxval=bound, dtype=jnp.float32)
    fc_b = jax.random.uniform(k_fb, (C,), minval=-bound, maxval=bound, dtype=jnp.float32)

    ref = reference(x_enc, w_omega, u_omega, fc_w, fc_b)

    # f32 path. Tolerance allows for MXU f32 matmul default-precision differences between
    # the in-kernel dot and the XLA reference (the approx reciprocal has been removed).
    out = jax.block_until_ready(attention_net_fc(x_enc, w_omega, u_omega, fc_w, fc_b))
    assert out.shape == (B, C)
    assert jnp.allclose(out, ref, atol=1e-3, rtol=1e-3), (out, ref)

    # bf16 MXU-operand path (recommended on v5e/v6e/v7x; f32 accumulation) — loose check.
    out_bf16 = jax.block_until_ready(
        attention_net_fc(x_enc, w_omega, u_omega, fc_w, fc_b, mxu_dtype=jnp.bfloat16))
    assert out_bf16.shape == (B, C)
    assert jnp.allclose(out_bf16, ref, atol=7.5e-2, rtol=7.5e-2), (out_bf16, ref)

    print("KERNEL_OK")
</pallas_src>

<mosaic_0001>
module attributes {stable_mosaic.version = 11 : i64} {
  func.func @_attn_pool_fc_kernel(%arg0: i32, %arg1: memref<2x8x32xf32, #tpu.memory_space<vmem>>, %arg2: memref<32x32xf32, #tpu.memory_space<vmem>>, %arg3: memref<1x32xf32, #tpu.memory_space<vmem>>, %arg4: memref<32x4xf32, #tpu.memory_space<vmem>>, %arg5: memref<1x4xf32, #tpu.memory_space<vmem>>, %arg6: memref<2x4xf32, #tpu.memory_space<vmem>>) attributes {dimension_semantics = [#tpu.dimension_semantics<parallel>], iteration_bounds = array<i64: 1>, scalar_prefetch = 0 : i64, scratch_operands = 0 : i64, tpu.core_type = #tpu.core_type<tc>, window_params = [{transform_indices = @transform_0, window_bounds = array<i64: 2, 8, 32>}, {pipeline_mode = #tpu.pipeline_mode<synchronous>, transform_indices = @transform_1, window_bounds = array<i64: 32, 32>}, {pipeline_mode = #tpu.pipeline_mode<synchronous>, transform_indices = @transform_2, window_bounds = array<i64: 1, 32>}, {pipeline_mode = #tpu.pipeline_mode<synchronous>, transform_indices = @transform_3, window_bounds = array<i64: 32, 4>}, {pipeline_mode = #tpu.pipeline_mode<synchronous>, transform_indices = @transform_4, window_bounds = array<i64: 1, 4>}, {transform_indices = @transform_5, window_bounds = array<i64: 2, 4>}]} {
    %c0 = arith.constant 0 : index
    %c0_0 = arith.constant 0 : index
    %c0_1 = arith.constant 0 : index
    %0 = vector.load %arg1[%c0, %c0_0, %c0_1] : memref<2x8x32xf32, #tpu.memory_space<vmem>>, vector<2x8x32xf32>
    %1 = vector.shape_cast %0 : vector<2x8x32xf32> to vector<16x32xf32>
    %c0_2 = arith.constant 0 : index
    %c0_3 = arith.constant 0 : index
    %2 = vector.load %arg2[%c0_2, %c0_3] : memref<32x32xf32, #tpu.memory_space<vmem>>, vector<32x32xf32>
    %cst = arith.constant dense<0.000000e+00> : vector<16x32xf32>
    %3 = tpu.matmul %1, %2, %cst {dimension_numbers = #tpu.dot_dimension_numbers<[1], [0], [0], [1], [0, 0, 1, 1], [], []>} : vector<16x32xf32>, vector<32x32xf32>, vector<16x32xf32> -> vector<16x32xf32>
    %4 = math.tanh %3 : vector<16x32xf32>
    %c0_4 = arith.constant 0 : index
    %c0_5 = arith.constant 0 : index
    %5 = vector.load %arg3[%c0_4, %c0_5] : memref<1x32xf32, #tpu.memory_space<vmem>>, vector<1x32xf32>
    %6 = vector.broadcast %5 : vector<1x32xf32> to vector<16x32xf32>
    %7 = arith.mulf %4, %6 : vector<16x32xf32>
    %cst_6 = arith.constant dense<0.000000e+00> : vector<16xf32>
    %8 = vector.multi_reduction <add>, %7, %cst_6 [1] : vector<16x32xf32> to vector<16xf32>
    %9 = vector.shape_cast %8 : vector<16xf32> to vector<16x1xf32>
    %10 = vector.shape_cast %9 : vector<16x1xf32> to vector<2x8x1xf32>
    %cst_7 = arith.constant dense<0xFF800000> : vector<2x1xf32>
    %11 = vector.multi_reduction <maximumf>, %10, %cst_7 [1] : vector<2x8x1xf32> to vector<2x1xf32>
    %12 = vector.shape_cast %11 : vector<2x1xf32> to vector<2x1x1xf32>
    %13 = vector.broadcast %12 : vector<2x1x1xf32> to vector<2x8x1xf32>
    %14 = arith.subf %10, %13 : vector<2x8x1xf32>
    %15 = math.exp %14 : vector<2x8x1xf32>
    %cst_8 = arith.constant dense<0.000000e+00> : vector<2x1xf32>
    %16 = vector.multi_reduction <add>, %15, %cst_8 [1] : vector<2x8x1xf32> to vector<2x1xf32>
    %17 = vector.shape_cast %16 : vector<2x1xf32> to vector<2x1x1xf32>
    %18 = vector.broadcast %17 : vector<2x1x1xf32> to vector<2x8x1xf32>
    %19 = arith.divf %15, %18 : vector<2x8x1xf32>
    %20 = vector.shape_cast %4 : vector<16x32xf32> to vector<2x8x32xf32>
    %21 = vector.broadcast %19 : vector<2x8x1xf32> to vector<2x8x32xf32>
    %22 = arith.mulf %20, %21 : vector<2x8x32xf32>
    %cst_9 = arith.constant dense<0.000000e+00> : vector<2x32xf32>
    %23 = vector.multi_reduction <add>, %22, %cst_9 [1] : vector<2x8x32xf32> to vector<2x32xf32>
    %c0_10 = arith.constant 0 : index
    %c0_11 = arith.constant 0 : index
    %24 = vector.load %arg4[%c0_10, %c0_11] : memref<32x4xf32, #tpu.memory_space<vmem>>, vector<32x4xf32>
    %cst_12 = arith.constant dense<0.000000e+00> : vector<2x4xf32>
    %25 = tpu.matmul %23, %24, %cst_12 {dimension_numbers = #tpu.dot_dimension_numbers<[1], [0], [0], [1], [0, 0, 1, 1], [], []>} : vector<2x32xf32>, vector<32x4xf32>, vector<2x4xf32> -> vector<2x4xf32>
    %c0_13 = arith.constant 0 : index
    %c0_14 = arith.constant 0 : index
    %26 = vector.load %arg5[%c0_13, %c0_14] : memref<1x4xf32, #tpu.memory_space<vmem>>, vector<1x4xf32>
    %27 = vector.broadcast %26 : vector<1x4xf32> to vector<2x4xf32>
    %28 = arith.addf %25, %27 : vector<2x4xf32>
    %c0_15 = arith.constant 0 : index
    %c0_16 = arith.constant 0 : index
    %29 = vector.load %arg6[%c0_15, %c0_16] : memref<2x4xf32, #tpu.memory_space<vmem>>, vector<2x4xf32>
    tpu.vector_store %arg6[%c0_15, %c0_16], %28 {strides = array<i32>} : memref<2x4xf32, #tpu.memory_space<vmem>>, vector<2x4xf32>,
    return
  }
  func.func @transform_0(%arg0: i32) -> (i32, i32, i32) {
    %c0_i32 = arith.constant 0 : i32
    %c0_i32_0 = arith.constant 0 : i32
    %c0_i32_1 = arith.constant 0 : i32
    return %arg0, %c0_i32, %c0_i32_0 : i32, i32, i32
  }
  func.func @transform_1(%arg0: i32) -> (i32, i32) {
    %c0_i32 = arith.constant 0 : i32
    %c0_i32_0 = arith.constant 0 : i32
    %c0_i32_1 = arith.constant 0 : i32
    return %c0_i32, %c0_i32_0 : i32, i32
  }
  func.func @transform_2(%arg0: i32) -> (i32, i32) {
    %c0_i32 = arith.constant 0 : i32
    %c0_i32_0 = arith.constant 0 : i32
    %c0_i32_1 = arith.constant 0 : i32
    return %c0_i32, %c0_i32_0 : i32, i32
  }
  func.func @transform_3(%arg0: i32) -> (i32, i32) {
    %c0_i32 = arith.constant 0 : i32
    %c0_i32_0 = arith.constant 0 : i32
    %c0_i32_1 = arith.constant 0 : i32
    return %c0_i32, %c0_i32_0 : i32, i32
  }
  func.func @transform_4(%arg0: i32) -> (i32, i32) {
    %c0_i32 = arith.constant 0 : i32
    %c0_i32_0 = arith.constant 0 : i32
    %c0_i32_1 = arith.constant 0 : i32
    return %c0_i32, %c0_i32_0 : i32, i32
  }
  func.func @transform_5(%arg0: i32) -> (i32, i32) {
    %c0_i32 = arith.constant 0 : i32
    %c0_i32_0 = arith.constant 0 : i32
    return %arg0, %c0_i32 : i32, i32
  }
}

</mosaic_0001>

<bundles_post_ra>
// kernel: tpu_custom_call.1
= control target key start
LH: loop header
LB: loop body
LE: loop exit
PB: predicated region body
PF: predicated region fallthrough
CT: control target
= control target key end

     0   :  { %10 = vsyncpa [#allocation3], 0  ;;  %s515_s0 = inlined_call_operand.hbm [shape: f32[2,8,32], index: 0, kind: input, shape index: {}]   ;;  %s516_s1 = inlined_call_operand.vmem [shape: f32[32,32], index: 1, kind: input, shape index: {}]   ;;  %s517_s2 = inlined_call_operand.vmem [shape: f32[1,32], index: 2, kind: input, shape index: {}]   ;;  %s518_s3 = inlined_call_operand.vmem [shape: f32[32,4], index: 3, kind: input, shape index: {}]   ;;  %s519_s4 = inlined_call_operand.vmem [shape: f32[1,4], index: 4, kind: input, shape index: {}]   ;;  %s520_s5 = inlined_call_operand.hbm [shape: f32[2,4], index: 5, kind: output, shape index: {}]  }
   0x1   :  { %11 = vsyncpa [#allocation4], 0  ;;  %s413_s18 = smov [#allocation2]   ;;  %s365_s22 = scalar_lea.hbm %s515_s0, 256 }
   0x2   :  { %s17_s19 = sshll.u32 %s413_s18, 4  ;;  %p366_p0 = scmp.ne.s32.totalorder %s515_s0, %s365_s22  ;;  %s18_s19 = int_to_ptr.vmem [resolvable:$true] %s17_s19 }
   0x3   :  { %p369_p1 = scmp.lt.u32.totalorder %s365_s22, %s515_s0 }
   0x5   :  { %p371_p2 = pnand %p369_p1, %p366_p0 }
   0x7   :  { %374 = shalt.err (!%p371_p2)
}
   0x8   :  { %s375_s27 = scalar_lea.vmem %s18_s19, 256  ;;  %p380_p4 = scmp.lt.s32.totalorder %s18_s19, %s18_s19 }
   0x9   :  { %p376_p3 = scmp.ne.s32.totalorder %s18_s19, %s375_s27  ;;  %p381_p5 = scmp.lt.s32.totalorder %s375_s27, %s375_s27 }
   0xb   :  { %p382_p6 = por %p381_p5, %p380_p4 }
   0xd   :  { %p383_p7 = pnand %p382_p6, %p376_p3 }
   0xf   :  { %386 = shalt.err (!%p383_p7)
}
  0x10   :  { %s414_s28 = smov 128   ;;  %s415_s29 = smov 8  }
  0x11   :  { %23 = dma.hbm_to_vmem [thread:$0]  %s515_s0, 256, %s18_s19, [#allocation3], %s414_s28, %s414_s28, %s415_s29  }
  0x12   :  { %409 = dma.done.wait [#allocation3], 256  }
  0x13   :  { %410 = vsyncadd [#allocation3], 4294967040  ;;  %vm41_vm0 = vcmask 261120   ;;  %v37_v0 = vld [vmem:[%s516_s1] sm:$0xff]  ;;  %v38_v1 = vld [vmem:[%s516_s1 + $0x8] sm:$0xff]  ;;  %v416_v20 = vmov 0.0|0.0  }
  0x14   :  { %v39_v2 = vld [vmem:[%s516_s1 + $0x10] sm:$0xff]  ;;  %v332_v3 = vpack.c.bf16 %v38_v1, %v37_v0  ;;  %v40_v4 = vld [vmem:[%s516_s1 + $0x18] sm:$0xff]  ;;  %v35_v5 = vld [vmem:[#allocation2] sm:$0xff]  ;;  %340 = vmatprep.subr.bf16.mxu1 %v416_v20  ;;  %vm417_vm1 = vmmov 0   ;;  %v418_v23 = vmov 0.0   ;;  %vm203_vm2 = vcmask 1041409  }
  0x15   :  { %v336_v6 = vpack.c.bf16 %v40_v4, %v39_v2  ;;  %318 = vmatprep.mubr.msk.f32.mxu0 %vm41_vm0, %v35_v5  ;;  %v36_v7 = vld [vmem:[#allocation2 + $0x8] sm:$0xff]  ;;  %v296_v10 = vld [vmem:[%s517_s2] ss:$0 sm:$0xff]  ;;  %v192_v19 = vld [vmem:[%s518_s3 + $0x10] sm:$0xff]  ;;  %329 = vmatprep.mubr.msk.f32.mxu1 %vm417_vm1, %v418_v23  ;;  %s419_s23 = smov [#allocation5]   ;;  %vm277_vm3 = vcmask 25600  }
  0x16   :  { %333 = vmatprep.subr.bf16.mxu0 %v332_v3  ;;  %v190_v17 = vld [vmem:[%s518_s3] sm:$0xff]  ;;  %v191_v18 = vld [vmem:[%s518_s3 + $0x8] sm:$0xff]  ;;  %v193_v22 = vld [vmem:[%s518_s3 + $0x18] sm:$0xff]  ;;  %s285_s24 = sshll.u32 %s419_s23, 4  ;;  %s286_s24 = int_to_ptr.vmem [resolvable:$true] %s285_s24 }
  0x17   :  { %335 = vmatpush3.bf16.msra.mxu0 %v332_v3  ;;  %v341_v21 = vpack.c.bf16 %v191_v18, %v190_v17  ;;  %v344_v24 = vpack.c.bf16 %v193_v22, %v192_v19  ;;  %s387_s25 = scalar_lea.vmem %s286_s24, 32  ;;  %p392_p9 = scmp.lt.s32.totalorder %s286_s24, %s286_s24 }
  0x18   :  { %337 = vmatprep.subr.bf16.mxu0 %v336_v6  ;;  %p388_p8 = scmp.ne.s32.totalorder %s286_s24, %s387_s25  ;;  %p393_p10 = scmp.lt.s32.totalorder %s387_s25, %s387_s25 }
  0x19   :  { %342 = vmatpush3.bf16.msra.mxu1 %v341_v21 }
  0x1a   :  { %343 = vmatprep.subr.bf16.mxu1 %v416_v20  ;;  %p394_p11 = por %p393_p10, %p392_p9 }
  0x1b   :  { %339 = vmatpush3.bf16.msra.mxu0 %v336_v6 }
  0x1c   :  { %p395_p12 = pnand %p394_p11, %p388_p8 }
  0x1d   :  { %345 = vmatpush3.bf16.msra.mxu1 %v344_v24 }
  0x1e   :  { %319 = vmatmul.mubr.msk.f32.vlgmr.msra.gmra.mrb[0].mxu0 %vm41_vm0, %v36_v7 }
  0xf1   :  { %v320_v8 = vpop.f32.mrb[0].mxu0 }
  0xf2   :  { %353 = vtanh.f32 %v320_v8  ;;  %v114_v9 = vpop.f32.mrb[1].mxu0 }
  0xf3   :  { %355 = vtanh.f32 %v114_v9 }
  0xfc   :  { %v479_v11 = vpop.eup %353 }
  0xfd   :  { %v356_v12 = vpop.eup %355  ;;  %v133_v15 = vmul.f32 %v479_v11, %v296_v10 }
  0xfe   :  { %v132_v13 = vmul.f32 %v356_v12, %v296_v10 }
  0xff   :  { %v137_v16 = vsel %vm41_vm0, %v133_v15, 0.0 }
 0x100   :  { %v134_v14 = vsel %vm41_vm0, %v132_v13, 0.0 }
 0x101   :  { %135 = vadd.xlane.f32.xlu0 %v134_v14 }
 0x105   :  { %138 = vadd.xlane.f32.xlu0 %v137_v16 }
 0x18e   :  { %v136_v25 = vpop.xlane.xlu0 %135 }
 0x18f   :  { %v140_v26 = vrot.slane %v136_v25, 4 }
 0x191   :  { %v141_v27 = vmax.f32 %v136_v25, %v140_v26 }
 0x192   :  { %v139_v28 = vpop.xlane.xlu0 %138 }
 0x193   :  { %v142_v29 = vrot.slane %v141_v27, 2  ;;  %v146_v30 = vrot.slane %v139_v28, 4 }
 0x195   :  { %v143_v31 = vmax.f32 %v141_v27, %v142_v29  ;;  %v147_v32 = vmax.f32 %v139_v28, %v146_v30 }
 0x197   :  { %v144_v33 = vrot.slane %v143_v31, 1  ;;  %v148_v34 = vrot.slane %v147_v32, 2 }
 0x199   :  { %v145_v35 = vmax.f32 %v143_v31, %v144_v33  ;;  %v149_v36 = vmax.f32 %v147_v32, %v148_v34 }
 0x19b   :  { %v152_v37 = vsub.f32 %v136_v25, %v145_v35  ;;  %v150_v38 = vrot.slane %v149_v36, 1 }
 0x19d   :  { %v154_v39 = vmul.f32 1.442695, %v152_v37  ;;  %v151_v40 = vmax.f32 %v149_v36, %v150_v38 }
 0x19f   :  { %357 = vpow2.f32 %v154_v39  ;;  %v153_v41 = vsub.f32 %v139_v28, %v151_v40 }
 0x1a1   :  { %v156_v42 = vmul.f32 1.442695, %v153_v41 }
 0x1a3   :  { %359 = vpow2.f32 %v156_v42 }
 0x1a9   :  { %v358_v43 = vpop.eup %357 }
 0x1aa   :  { %v158_v44 = vrot.slane %v358_v43, 4 }
 0x1ac   :  { %v159_v45 = vadd.f32 %v358_v43, %v158_v44 }
 0x1ad   :  { %v360_v46 = vpop.eup %359 }
 0x1ae   :  { %v160_v47 = vrot.slane %v159_v45, 2  ;;  %v164_v48 = vrot.slane %v360_v46, 4 }
 0x1b0   :  { %v165_v49 = vadd.f32 %v360_v46, %v164_v48  ;;  %v161_v50 = vadd.f32 %v160_v47, %v159_v45 }
 0x1b2   :  { %v166_v51 = vrot.slane %v165_v49, 2  ;;  %v162_v52 = vrot.slane %v161_v50, 1 }
 0x1b4   :  { %v167_v53 = vadd.f32 %v166_v51, %v165_v49  ;;  %v163_v54 = vadd.f32 %v162_v52, %v161_v50 }
 0x1b6   :  { %v168_v55 = vrot.slane %v167_v53, 1  ;;  %361 = vrcp.f32 %v163_v54 }
 0x1b8   :  { %v169_v56 = vadd.f32 %v168_v55, %v167_v53 }
 0x1ba   :  { %363 = vrcp.f32 %v169_v56 }
 0x1c0   :  { %v362_v57 = vpop.eup %361 }
 0x1c1   :  { %v171_v58 = vmul.f32 %v362_v57, %v358_v43 }
 0x1c3   :  { %v174_v59 = vmul.f32 %v356_v12, %v171_v58 }
 0x1c4   :  { %v364_v60 = vpop.eup %363 }
 0x1c5   :  { %v173_v61 = vmul.f32 %v364_v60, %v360_v46  ;;  %v176_v62 = vsel %vm41_vm0, %v174_v59, 0.0 }
 0x1c6   :  { %v177_v63 = vrot.slane %v176_v62, 4 }
 0x1c7   :  { %v175_v0 = vmul.f32 %v479_v11, %v173_v61  ;;  %v297_v11 = vld [vmem:[%s519_s4] ss:$0 sm:$0xff] }
 0x1c8   :  { %v178_v1 = vadd.f32 %v177_v63, %v176_v62 }
 0x1c9   :  { %v183_v2 = vsel %vm41_vm0, %v175_v0, 0.0 }
 0x1ca   :  { %v179_v3 = vrot.slane %v178_v1, 2  ;;  %v184_v4 = vrot.slane %v183_v2, 4 }
 0x1cc   :  { %v180_v5 = vadd.f32 %v179_v3, %v178_v1  ;;  %v185_v6 = vadd.f32 %v184_v4, %v183_v2 }
 0x1ce   :  { %v186_v7 = vrot.slane %v185_v6, 2  ;;  %v181_v8 = vrot.slane %v180_v5, 1 }
 0x1d0   :  { %v187_v9 = vadd.f32 %v186_v7, %v185_v6  ;;  %v182_v12 = vadd.f32 %v181_v8, %v180_v5 }
 0x1d2   :  { %v188_v10 = vrot.slane %v187_v9, 1 }
 0x1d4   :  { %v189_v13 = vadd.f32 %v188_v10, %v187_v9 }
 0x1d6   :  { %v204_v14 = vsel %vm203_vm2, %v189_v13, %v182_v12 }
 0x1d7   :  { %330 = vmatmul.mubr.msk.f32.vlgmr.msra.gmra.mrb[0].mxu1 %vm41_vm0, %v204_v14 }
 0x2aa   :  { %v273_v15 = vpop.f32.mrb[0].mxu1 }
 0x2ab   :  { %v274_v16 = vadd.f32 %v297_v11, %v273_v15  ;;  %v331_v17 = vpop.f32.mrb[1].mxu1 }
 0x2ad   :  { %278 = vst.msk [vmem:[#allocation5] sm:$0x3] %vm277_vm3, %v274_v16 }
 0x2ae   :  { %398 = shalt.err (!%p395_p12)
}
 0x2af   :  { %s399_s28 = scalar_lea.hbm %s520_s5, 32 }
 0x2b0   :  { %p400_p13 = scmp.ne.s32.totalorder %s520_s5, %s399_s28  ;;  %p403_p0 = scmp.lt.u32.totalorder %s399_s28, %s520_s5 }
 0x2b2   :  { %p405_p1 = pnand %p403_p0, %p400_p13 }
 0x2b4   :  { %408 = shalt.err (!%p405_p1)
}
 0x2b5   :  { %288 = dma.vmem_to_hbm [thread:$0]  %s286_s24, 32, %s520_s5, [#allocation4]  }
 0x2b6   :  { %411 = dma.done.wait [#allocation4], 32  }
 0x2b7   :  { %412 = vsyncadd [#allocation4], 4294967264 }
 0x2b8   :  { %292 = vsyncpa [#allocation3], 1 }
 0x2b9   :  { %293 = vsyncpa [#allocation4], 1 }

</bundles_post_ra>
